<compile_context>
chip_gen: v5e
topology: v5e:2x2
jax: 0.10.0
libtpu: 0.0.40
codegen_flags: <defaults>
</compile_context>

<pallas_src>
import numpy as np
import jax
import jax.numpy as jnp
from jax import lax
from jax.experimental import pallas as pl
from jax.experimental.pallas import tpu as pltpu

# ----------------------------- hyperparameters (small, consistent with the module) ----------------
B = 2
IN_CH = 8            # in_channels
HIDDEN = 16          # hidden_channels
LATENT = 8           # latent_channels
K_WN = 3             # kernel_size (WN)
N_LAYERS = 2         # n_layers
GIN = 8              # gin_channels
STRIDE = 4           # strides = [4]
K_PRE = 2 * STRIDE   # pre_net kernel = s*2
PAD_PRE = STRIDE // 2
PAD_WN = (K_WN - 1) // 2        # dilation_rate = 1
L_IN = 64
T = (L_IN + 2 * PAD_PRE - K_PRE) // STRIDE + 1   # downsampled length (=16)
BT = B * T                                       # 32 rows = 4 f32 sublane-tiles

# ----------------------------- packed parameter-slab layout (static python ints) -------------------
SLAB_COLS = 2 * HIDDEN                                                   # 32 lanes
R_PRE = 0                                                                # (IN_CH*K_PRE, H)
R_L = [IN_CH * K_PRE + i * (3 * HIDDEN + GIN) for i in range(N_LAYERS)]  # fused taps+cond (56, 2H)
R_RS = [R_L[-1] + (3 * HIDDEN + GIN) + i * HIDDEN for i in range(N_LAYERS)]  # (H,2H) / (H,H)
R_OUT = R_RS[-1] + HIDDEN                                                # (H, 2*LATENT)
R_B = R_OUT + HIDDEN                                                     # bias rows start
N_BIAS = 2 + 2 * N_LAYERS
SLAB_ROWS = ((R_B + N_BIAS + 7) // 8) * 8                                # 232


# ----------------------------- Pallas kernel -------------------------------------------------------
def fvae_encoder_kernel(patches_ref, mask_ref, g_ref, noise_ref, w_ref, out_ref):
    f32 = jnp.float32
    H = HIDDEN

    patches = patches_ref[...]            # (BT, IN_CH*K_PRE)  im2col of the strided pre_net conv
    mask = mask_ref[:, 0:1]               # (BT, 1)  downsampled x_mask
    not_first = mask_ref[:, 1:2]          # 0 where t == 0   inside each batch (conv zero padding)
    not_last = mask_ref[:, 2:3]           # 0 where t == T-1 inside each batch
    g = g_ref[...]                        # (BT, GIN)
    noise = noise_ref[...]                # (BT, LATENT)

    # pre_net strided conv: a single (BT, Cin*K) @ (Cin*K, H) matmul, then x = pre_net(x) * x_mask
    h = jnp.dot(patches, w_ref[R_PRE:R_PRE + IN_CH * K_PRE, 0:H],
                preferred_element_type=f32) + w_ref[R_B:R_B + 1, 0:H]
    h = h * mask

    zrow = jnp.zeros((1, H), f32)
    output = jnp.zeros((BT, H), f32)

    for i in range(N_LAYERS):
        # batch-safe time shifts, kept in vregs (zero-row concat = sublane shift on the XLU);
        # the boundary masks kill the one row per batch that would leak across the batch seam.
        h_prev = jnp.concatenate([zrow, h[:-1, :]], axis=0) * not_first    # h[t-1] (tap k=0)
        h_next = jnp.concatenate([h[1:, :], zrow], axis=0) * not_last      # h[t+1] (tap k=2)

        # fused in_layer (3 taps) + cond_layer slice + tanh|sigmoid halves: one 56-deep contraction
        hk = jnp.concatenate([h_prev, h, h_next, g], axis=-1)              # (BT, 3H+GIN)
        rl = R_L[i]
        pre = jnp.dot(hk, w_ref[rl:rl + 3 * H + GIN, 0:2 * H],
                      preferred_element_type=f32) + w_ref[R_B + 1 + i:R_B + 2 + i, 0:2 * H]
        acts = jnp.tanh(pre[:, :H]) * jax.nn.sigmoid(pre[:, H:])

        # res_skip 1x1 conv (res half only for non-final layers), one matmul per layer
        rr = R_RS[i]
        rb = R_B + 1 + N_LAYERS + i
        if i < N_LAYERS - 1:
            rs = jnp.dot(acts, w_ref[rr:rr + H, 0:2 * H],
                         preferred_element_type=f32) + w_ref[rb:rb + 1, 0:2 * H]
            h = (h + rs[:, :H]) * mask
            output = output + rs[:, H:]
        else:
            skip = jnp.dot(acts, w_ref[rr:rr + H, 0:H],
                           preferred_element_type=f32) + w_ref[rb:rb + 1, 0:H]
            output = output + skip

    # WN returns output * x_mask; encoder multiplies by x_mask again (mask is 0/1 so idempotent)
    x_enc = (output * mask) * mask

    # out_proj 1x1 conv, both halves [m | logs] from one matmul, then reparameterized sample
    rob = R_B + 1 + 2 * N_LAYERS
    ml = jnp.dot(x_enc, w_ref[R_OUT:R_OUT + H, 0:2 * LATENT],
                 preferred_element_type=f32) + w_ref[rob:rob + 1, 0:2 * LATENT]
    m = ml[:, :LATENT]
    logs = ml[:, LATENT:]
    z = m + noise * jnp.exp(logs)

    out_ref[...] = jnp.concatenate([z, ml], axis=-1)     # single lane-dense slab [z | m | logs]


# ----------------------------- glue ----------------------------------------------------------------
def im2col_1d(x, kernel, stride, pad):
    """x: (B, C, L) -> patches (B, T, C*kernel) with patches[b,t,c*K+k] = x_pad[b,c,t*stride+k]."""
    b_, c_, l_ = x.shape
    xp = jnp.pad(x, ((0, 0), (0, 0), (pad, pad)))
    t_ = (l_ + 2 * pad - kernel) // stride + 1
    idx = jnp.arange(t_)[:, None] * stride + jnp.arange(kernel)[None, :]   # (T, K)
    cols = xp[:, :, idx]                                                    # (B, C, T, K)
    return jnp.transpose(cols, (0, 2, 1, 3)).reshape(b_, t_, c_ * kernel)


_VMEM_SPEC = pl.BlockSpec(memory_space=pltpu.MemorySpace.VMEM)


@jax.jit
def fvae_encoder_pallas(x, x_mask, g, w_slab, noise_ncl):
    """x:(B,IN_CH,L_IN)  x_mask:(B,1,L_IN)  g:(B,GIN,T)  noise_ncl:(B,LATENT,T). Returns NCL outputs.
    All host-side prep (im2col, transposes, mask downsample) is fused under this jit."""
    mask_ds = x_mask[:, :, ::STRIDE][:, :, :T]                                  # (B,1,T)
    patches = im2col_1d(x, K_PRE, STRIDE, PAD_PRE).reshape(BT, IN_CH * K_PRE)   # (BT, Cin*K)
    mask_f = jnp.transpose(mask_ds, (0, 2, 1)).reshape(BT, 1)
    tpos = jnp.arange(T)
    not_first = jnp.tile((tpos != 0).astype(jnp.float32), B)[:, None]           # (BT,1)
    not_last = jnp.tile((tpos != T - 1).astype(jnp.float32), B)[:, None]        # (BT,1)
    maskpack = jnp.concatenate([mask_f, not_first, not_last], axis=-1)          # (BT,3)
    g_f = jnp.transpose(g, (0, 2, 1)).reshape(BT, GIN)
    noise_f = jnp.transpose(noise_ncl, (0, 2, 1)).reshape(BT, LATENT)

    out = pl.pallas_call(
        fvae_encoder_kernel,
        out_shape=jax.ShapeDtypeStruct((BT, 3 * LATENT), jnp.float32),
        in_specs=[_VMEM_SPEC] * 5,
        out_specs=_VMEM_SPEC,
    )(patches, maskpack, g_f, noise_f, w_slab)

    out_btc = out.reshape(B, T, 3 * LATENT)
    z = jnp.transpose(out_btc[..., 0:LATENT], (0, 2, 1))
    m = jnp.transpose(out_btc[..., LATENT:2 * LATENT], (0, 2, 1))
    logs = jnp.transpose(out_btc[..., 2 * LATENT:], (0, 2, 1))
    return z, m, logs, mask_ds


# ----------------------------- deterministic parameter init (PyTorch-shaped) ----------------------
def init_params(key):
    ks = jax.random.split(key, 20)
    r = lambda k, s: 0.1 * jax.random.normal(k, s, dtype=jnp.float32)
    p = {
        'w_pre': r(ks[0], (HIDDEN, IN_CH, K_PRE)), 'b_pre': r(ks[1], (HIDDEN,)),
        'w_cond': r(ks[2], (2 * HIDDEN * N_LAYERS, GIN, 1)), 'b_cond': r(ks[3], (2 * HIDDEN * N_LAYERS,)),
        'w_in': [r(ks[4 + i], (2 * HIDDEN, HIDDEN, K_WN)) for i in range(N_LAYERS)],
        'b_in': [r(ks[6 + i], (2 * HIDDEN,)) for i in range(N_LAYERS)],
        'w_rs': [], 'b_rs': [],
        'w_out': r(ks[12], (2 * LATENT, HIDDEN, 1)), 'b_out': r(ks[13], (2 * LATENT,)),
    }
    for i in range(N_LAYERS):
        oc = 2 * HIDDEN if i < N_LAYERS - 1 else HIDDEN
        p['w_rs'].append(r(ks[8 + i], (oc, HIDDEN, 1)))
        p['b_rs'].append(r(ks[10 + i], (oc,)))
    return p


def pack_params(p):
    """Pack all weights + biases into one (SLAB_ROWS, SLAB_COLS) f32 slab, statically sliced in-kernel."""
    H = HIDDEN
    slab = np.zeros((SLAB_ROWS, SLAB_COLS), np.float32)
    a = np.asarray

    # pre_net: (H, Cin, K) -> (Cin*K, H), row index c*K+k matches the im2col patch layout
    slab[R_PRE:R_PRE + IN_CH * K_PRE, 0:H] = a(p['w_pre']).reshape(H, IN_CH * K_PRE).T
    slab[R_B, 0:H] = a(p['b_pre'])

    for i in range(N_LAYERS):
        rl = R_L[i]
        w_in = a(p['w_in'][i])                                  # (2H, H, K)
        for k in range(K_WN):
            slab[rl + k * H: rl + (k + 1) * H, 0:H] = w_in[:H, :, k].T       # tanh half
            slab[rl + k * H: rl + (k + 1) * H, H:2 * H] = w_in[H:, :, k].T   # sigmoid half
        wc = a(p['w_cond'])[i * 2 * H:(i + 1) * 2 * H, :, 0]    # (2H, GIN) this layer's cond slice
        slab[rl + K_WN * H: rl + K_WN * H + GIN, 0:H] = wc[:H].T
        slab[rl + K_WN * H: rl + K_WN * H + GIN, H:2 * H] = wc[H:].T
        slab[R_B + 1 + i, 0:2 * H] = a(p['b_in'][i]) + a(p['b_cond'])[i * 2 * H:(i + 1) * 2 * H]

        rr = R_RS[i]
        w_rs = a(p['w_rs'][i])[:, :, 0]
        if i < N_LAYERS - 1:
            slab[rr:rr + H, 0:H] = w_rs[:H].T                   # res
            slab[rr:rr + H, H:2 * H] = w_rs[H:].T               # skip
            slab[R_B + 1 + N_LAYERS + i, 0:2 * H] = a(p['b_rs'][i])
        else:                                                   # last layer: skip only
            slab[rr:rr + H, 0:H] = w_rs[:H].T
            slab[R_B + 1 + N_LAYERS + i, 0:H] = a(p['b_rs'][i])[:H]

    wo = a(p['w_out'])[:, :, 0]                                 # (2*LATENT, H)
    slab[R_OUT:R_OUT + H, 0:2 * LATENT] = wo.T                  # cols [m | logs]
    slab[R_B + 1 + 2 * N_LAYERS, 0:2 * LATENT] = a(p['b_out'])
    return jnp.asarray(slab)


# ----------------------------- pure-JAX reference (PyTorch semantics, NCL) -------------------------
def _conv1d_ncl(x, w, b, stride=1, padding=0):
    out = lax.conv_general_dilated(x, w, window_strides=(stride,), padding=[(padding, padding)],
                                   dimension_numbers=('NCH', 'OIH', 'NCH'),
                                   precision=lax.Precision.HIGHEST)
    return out + b[None, :, None]


def ref_forward(x, x_mask, g, p, noise_ncl):
    h = _conv1d_ncl(x, p['w_pre'], p['b_pre'], stride=STRIDE, padding=PAD_PRE)
    mask_ds = x_mask[:, :, ::int(np.prod([STRIDE]))][:, :, :h.shape[-1]]
    h = h * mask_ds
    g_cond = _conv1d_ncl(g, p['w_cond'], p['b_cond'])
    output = jnp.zeros_like(h)
    for i in range(N_LAYERS):
        x_in = _conv1d_ncl(h, p['w_in'][i], p['b_in'][i], padding=PAD_WN)
        g_l = g_cond[:, i * 2 * HIDDEN:(i + 1) * 2 * HIDDEN, :]
        s = x_in + g_l
        acts = jnp.tanh(s[:, :HIDDEN]) * jax.nn.sigmoid(s[:, HIDDEN:])
        rs = _conv1d_ncl(acts, p['w_rs'][i], p['b_rs'][i])
        if i < N_LAYERS - 1:
            h = (h + rs[:, :HIDDEN]) * mask_ds
            output = output + rs[:, HIDDEN:]
        else:
            output = output + rs
    x_enc = (output * mask_ds) * mask_ds
    out = _conv1d_ncl(x_enc, p['w_out'], p['b_out'])
    m, logs = out[:, :LATENT], out[:, LATENT:]
    z = m + noise_ncl * jnp.exp(logs)
    return z, m, logs, mask_ds


# ----------------------------- main ----------------------------------------------------------------
if __name__ == "__main__":
    key = jax.random.PRNGKey(0)
    k_par, k_x, k_g, k_noise = jax.random.split(key, 4)

    params = init_params(k_par)
    w_slab = pack_params(params)

    x = jax.random.normal(k_x, (B, IN_CH, L_IN), dtype=jnp.float32)
    x_mask = jnp.ones((B, 1, L_IN), jnp.float32).at[1, :, 40:].set(0.0)
    g = jax.random.normal(k_g, (B, GIN, T), dtype=jnp.float32)
    # torch.randn_like(m) -> deterministic standard-normal noise fed into the kernel
    noise = jax.random.normal(k_noise, (B, LATENT, T), dtype=jnp.float32)

    z, m, logs, mask_out = fvae_encoder_pallas(x, x_mask, g, w_slab, noise)
    jax.block_until_ready((z, m, logs, mask_out))

    z_r, m_r, logs_r, mask_r = ref_forward(x, x_mask, g, params, noise)
    err = max(float(jnp.max(jnp.abs(z - z_r))),
              float(jnp.max(jnp.abs(m - m_r))),
              float(jnp.max(jnp.abs(logs - logs_r))),
              float(jnp.max(jnp.abs(mask_out - mask_r))))
    # Tolerance tightened 5e-2 -> 1e-2 (kernel dots use default-precision f32 MXU passes vs the
    # HIGHEST-precision reference convs; any layout/slicing regression would exceed 1e-1.)
    assert err < 1e-2, f"mismatch vs reference: {err}"
    assert z.shape == (B, LATENT, T) and m.shape == (B, LATENT, T)
    assert logs.shape == (B, LATENT, T) and mask_out.shape == (B, 1, T)
    print("KERNEL_OK")
</pallas_src>

<mosaic_0001>
module attributes {stable_mosaic.version = 11 : i64} {
  func.func @fvae_encoder_kernel(%arg0: memref<32x64xf32, #tpu.memory_space<vmem>>, %arg1: memref<32x3xf32, #tpu.memory_space<vmem>>, %arg2: memref<32x8xf32, #tpu.memory_space<vmem>>, %arg3: memref<32x8xf32, #tpu.memory_space<vmem>>, %arg4: memref<232x32xf32, #tpu.memory_space<vmem>>, %arg5: memref<32x24xf32, #tpu.memory_space<vmem>>) attributes {dimension_semantics = [], scalar_prefetch = 0 : i64, scratch_operands = 0 : i64, tpu.core_type = #tpu.core_type<tc>} {
    %c0 = arith.constant 0 : index
    %c0_0 = arith.constant 0 : index
    %0 = vector.load %arg0[%c0, %c0_0] : memref<32x64xf32, #tpu.memory_space<vmem>>, vector<32x64xf32>
    %c0_1 = arith.constant 0 : index
    %c0_2 = arith.constant 0 : index
    %1 = vector.load %arg1[%c0_1, %c0_2] : memref<32x3xf32, #tpu.memory_space<vmem>>, vector<32x1xf32>
    %c0_3 = arith.constant 0 : index
    %c1 = arith.constant 1 : index
    %2 = vector.load %arg1[%c0_3, %c1] : memref<32x3xf32, #tpu.memory_space<vmem>>, vector<32x1xf32>
    %c0_4 = arith.constant 0 : index
    %c2 = arith.constant 2 : index
    %3 = vector.load %arg1[%c0_4, %c2] : memref<32x3xf32, #tpu.memory_space<vmem>>, vector<32x1xf32>
    %c0_5 = arith.constant 0 : index
    %c0_6 = arith.constant 0 : index
    %4 = vector.load %arg2[%c0_5, %c0_6] : memref<32x8xf32, #tpu.memory_space<vmem>>, vector<32x8xf32>
    %c0_7 = arith.constant 0 : index
    %c0_8 = arith.constant 0 : index
    %5 = vector.load %arg3[%c0_7, %c0_8] : memref<32x8xf32, #tpu.memory_space<vmem>>, vector<32x8xf32>
    %c0_9 = arith.constant 0 : index
    %c0_10 = arith.constant 0 : index
    %6 = vector.load %arg4[%c0_9, %c0_10] : memref<232x32xf32, #tpu.memory_space<vmem>>, vector<64x16xf32>
    %cst = arith.constant dense<0.000000e+00> : vector<32x16xf32>
    %7 = tpu.matmul %0, %6, %cst {dimension_numbers = #tpu.dot_dimension_numbers<[1], [0], [0], [1], [0, 0, 1, 1], [], []>} : vector<32x64xf32>, vector<64x16xf32>, vector<32x16xf32> -> vector<32x16xf32>
    %c224 = arith.constant 224 : index
    %c0_11 = arith.constant 0 : index
    %8 = vector.load %arg4[%c224, %c0_11] : memref<232x32xf32, #tpu.memory_space<vmem>>, vector<1x16xf32>
    %9 = vector.broadcast %8 : vector<1x16xf32> to vector<32x16xf32>
    %10 = arith.addf %7, %9 : vector<32x16xf32>
    %11 = vector.broadcast %1 : vector<32x1xf32> to vector<32x16xf32>
    %12 = arith.mulf %10, %11 : vector<32x16xf32>
    %cst_12 = arith.constant 0.000000e+00 : f32
    %13 = vector.broadcast %cst_12 : f32 to vector<1x16xf32>
    %cst_13 = arith.constant 0.000000e+00 : f32
    %14 = vector.broadcast %cst_13 : f32 to vector<32x16xf32>
    %15 = vector.extract_strided_slice %12 {offsets = [0, 0], sizes = [31, 16], strides = [1, 1]} : vector<32x16xf32> to vector<31x16xf32>
    %16 = tpu.concatenate %13, %15 in 0 : vector<1x16xf32>, vector<31x16xf32> -> vector<32x16xf32>
    %17 = vector.broadcast %2 : vector<32x1xf32> to vector<32x16xf32>
    %18 = arith.mulf %16, %17 : vector<32x16xf32>
    %19 = vector.extract_strided_slice %12 {offsets = [1, 0], sizes = [31, 16], strides = [1, 1]} : vector<32x16xf32> to vector<31x16xf32>
    %20 = tpu.concatenate %19, %13 in 0 : vector<31x16xf32>, vector<1x16xf32> -> vector<32x16xf32>
    %21 = vector.broadcast %3 : vector<32x1xf32> to vector<32x16xf32>
    %22 = arith.mulf %20, %21 : vector<32x16xf32>
    %23 = tpu.concatenate %18, %12, %22, %4 in 1 : vector<32x16xf32>, vector<32x16xf32>, vector<32x16xf32>, vector<32x8xf32> -> vector<32x56xf32>
    %c64 = arith.constant 64 : index
    %c0_14 = arith.constant 0 : index
    %24 = vector.load %arg4[%c64, %c0_14] : memref<232x32xf32, #tpu.memory_space<vmem>>, vector<56x32xf32>
    %cst_15 = arith.constant dense<0.000000e+00> : vector<32x32xf32>
    %25 = tpu.matmul %23, %24, %cst_15 {dimension_numbers = #tpu.dot_dimension_numbers<[1], [0], [0], [1], [0, 0, 1, 1], [], []>} : vector<32x56xf32>, vector<56x32xf32>, vector<32x32xf32> -> vector<32x32xf32>
    %c225 = arith.constant 225 : index
    %c0_16 = arith.constant 0 : index
    %26 = vector.load %arg4[%c225, %c0_16] : memref<232x32xf32, #tpu.memory_space<vmem>>, vector<1x32xf32>
    %27 = vector.broadcast %26 : vector<1x32xf32> to vector<32x32xf32>
    %28 = arith.addf %25, %27 : vector<32x32xf32>
    %29 = vector.extract_strided_slice %28 {offsets = [0, 0], sizes = [32, 16], strides = [1, 1]} : vector<32x32xf32> to vector<32x16xf32>
    %30 = math.tanh %29 : vector<32x16xf32>
    %31 = vector.extract_strided_slice %28 {offsets = [0, 16], sizes = [32, 16], strides = [1, 1]} : vector<32x32xf32> to vector<32x16xf32>
    %32 = arith.negf %31 : vector<32x16xf32>
    %33 = math.exp %32 : vector<32x16xf32>
    %cst_17 = arith.constant 1.000000e+00 : f32
    %34 = vector.broadcast %cst_17 : f32 to vector<32x16xf32>
    %35 = arith.addf %34, %33 : vector<32x16xf32>
    %36 = arith.divf %34, %35 : vector<32x16xf32>
    %37 = arith.mulf %30, %36 : vector<32x16xf32>
    %c176 = arith.constant 176 : index
    %c0_18 = arith.constant 0 : index
    %38 = vector.load %arg4[%c176, %c0_18] : memref<232x32xf32, #tpu.memory_space<vmem>>, vector<16x32xf32>
    %cst_19 = arith.constant dense<0.000000e+00> : vector<32x32xf32>
    %39 = tpu.matmul %37, %38, %cst_19 {dimension_numbers = #tpu.dot_dimension_numbers<[1], [0], [0], [1], [0, 0, 1, 1], [], []>} : vector<32x16xf32>, vector<16x32xf32>, vector<32x32xf32> -> vector<32x32xf32>
    %c227 = arith.constant 227 : index
    %c0_20 = arith.constant 0 : index
    %40 = vector.load %arg4[%c227, %c0_20] : memref<232x32xf32, #tpu.memory_space<vmem>>, vector<1x32xf32>
    %41 = vector.broadcast %40 : vector<1x32xf32> to vector<32x32xf32>
    %42 = arith.addf %39, %41 : vector<32x32xf32>
    %43 = vector.extract_strided_slice %42 {offsets = [0, 0], sizes = [32, 16], strides = [1, 1]} : vector<32x32xf32> to vector<32x16xf32>
    %44 = arith.addf %12, %43 : vector<32x16xf32>
    %45 = vector.broadcast %1 : vector<32x1xf32> to vector<32x16xf32>
    %46 = arith.mulf %44, %45 : vector<32x16xf32>
    %47 = vector.extract_strided_slice %42 {offsets = [0, 16], sizes = [32, 16], strides = [1, 1]} : vector<32x32xf32> to vector<32x16xf32>
    %48 = arith.addf %14, %47 : vector<32x16xf32>
    %49 = vector.extract_strided_slice %46 {offsets = [0, 0], sizes = [31, 16], strides = [1, 1]} : vector<32x16xf32> to vector<31x16xf32>
    %50 = tpu.concatenate %13, %49 in 0 : vector<1x16xf32>, vector<31x16xf32> -> vector<32x16xf32>
    %51 = vector.broadcast %2 : vector<32x1xf32> to vector<32x16xf32>
    %52 = arith.mulf %50, %51 : vector<32x16xf32>
    %53 = vector.extract_strided_slice %46 {offsets = [1, 0], sizes = [31, 16], strides = [1, 1]} : vector<32x16xf32> to vector<31x16xf32>
    %54 = tpu.concatenate %53, %13 in 0 : vector<31x16xf32>, vector<1x16xf32> -> vector<32x16xf32>
    %55 = vector.broadcast %3 : vector<32x1xf32> to vector<32x16xf32>
    %56 = arith.mulf %54, %55 : vector<32x16xf32>
    %57 = tpu.concatenate %52, %46, %56, %4 in 1 : vector<32x16xf32>, vector<32x16xf32>, vector<32x16xf32>, vector<32x8xf32> -> vector<32x56xf32>
    %c120 = arith.constant 120 : index
    %c0_21 = arith.constant 0 : index
    %58 = vector.load %arg4[%c120, %c0_21] : memref<232x32xf32, #tpu.memory_space<vmem>>, vector<56x32xf32>
    %cst_22 = arith.constant dense<0.000000e+00> : vector<32x32xf32>
    %59 = tpu.matmul %57, %58, %cst_22 {dimension_numbers = #tpu.dot_dimension_numbers<[1], [0], [0], [1], [0, 0, 1, 1], [], []>} : vector<32x56xf32>, vector<56x32xf32>, vector<32x32xf32> -> vector<32x32xf32>
    %c226 = arith.constant 226 : index
    %c0_23 = arith.constant 0 : index
    %60 = vector.load %arg4[%c226, %c0_23] : memref<232x32xf32, #tpu.memory_space<vmem>>, vector<1x32xf32>
    %61 = vector.broadcast %60 : vector<1x32xf32> to vector<32x32xf32>
    %62 = arith.addf %59, %61 : vector<32x32xf32>
    %63 = vector.extract_strided_slice %62 {offsets = [0, 0], sizes = [32, 16], strides = [1, 1]} : vector<32x32xf32> to vector<32x16xf32>
    %64 = math.tanh %63 : vector<32x16xf32>
    %65 = vector.extract_strided_slice %62 {offsets = [0, 16], sizes = [32, 16], strides = [1, 1]} : vector<32x32xf32> to vector<32x16xf32>
    %66 = arith.negf %65 : vector<32x16xf32>
    %67 = math.exp %66 : vector<32x16xf32>
    %cst_24 = arith.constant 1.000000e+00 : f32
    %68 = vector.broadcast %cst_24 : f32 to vector<32x16xf32>
    %69 = arith.addf %68, %67 : vector<32x16xf32>
    %70 = arith.divf %68, %69 : vector<32x16xf32>
    %71 = arith.mulf %64, %70 : vector<32x16xf32>
    %c192 = arith.constant 192 : index
    %c0_25 = arith.constant 0 : index
    %72 = vector.load %arg4[%c192, %c0_25] : memref<232x32xf32, #tpu.memory_space<vmem>>, vector<16x16xf32>
    %cst_26 = arith.constant dense<0.000000e+00> : vector<32x16xf32>
    %73 = tpu.matmul %71, %72, %cst_26 {dimension_numbers = #tpu.dot_dimension_numbers<[1], [0], [0], [1], [0, 0, 1, 1], [], []>} : vector<32x16xf32>, vector<16x16xf32>, vector<32x16xf32> -> vector<32x16xf32>
    %c228 = arith.constant 228 : index
    %c0_27 = arith.constant 0 : index
    %74 = vector.load %arg4[%c228, %c0_27] : memref<232x32xf32, #tpu.memory_space<vmem>>, vector<1x16xf32>
    %75 = vector.broadcast %74 : vector<1x16xf32> to vector<32x16xf32>
    %76 = arith.addf %73, %75 : vector<32x16xf32>
    %77 = arith.addf %48, %76 : vector<32x16xf32>
    %78 = vector.broadcast %1 : vector<32x1xf32> to vector<32x16xf32>
    %79 = arith.mulf %77, %78 : vector<32x16xf32>
    %80 = vector.broadcast %1 : vector<32x1xf32> to vector<32x16xf32>
    %81 = arith.mulf %79, %80 : vector<32x16xf32>
    %c208 = arith.constant 208 : index
    %c0_28 = arith.constant 0 : index
    %82 = vector.load %arg4[%c208, %c0_28] : memref<232x32xf32, #tpu.memory_space<vmem>>, vector<16x16xf32>
    %cst_29 = arith.constant dense<0.000000e+00> : vector<32x16xf32>
    %83 = tpu.matmul %81, %82, %cst_29 {dimension_numbers = #tpu.dot_dimension_numbers<[1], [0], [0], [1], [0, 0, 1, 1], [], []>} : vector<32x16xf32>, vector<16x16xf32>, vector<32x16xf32> -> vector<32x16xf32>
    %c229 = arith.constant 229 : index
    %c0_30 = arith.constant 0 : index
    %84 = vector.load %arg4[%c229, %c0_30] : memref<232x32xf32, #tpu.memory_space<vmem>>, vector<1x16xf32>
    %85 = vector.broadcast %84 : vector<1x16xf32> to vector<32x16xf32>
    %86 = arith.addf %83, %85 : vector<32x16xf32>
    %87 = vector.extract_strided_slice %86 {offsets = [0, 0], sizes = [32, 8], strides = [1, 1]} : vector<32x16xf32> to vector<32x8xf32>
    %88 = vector.extract_strided_slice %86 {offsets = [0, 8], sizes = [32, 8], strides = [1, 1]} : vector<32x16xf32> to vector<32x8xf32>
    %89 = math.exp %88 : vector<32x8xf32>
    %90 = arith.mulf %5, %89 : vector<32x8xf32>
    %91 = arith.addf %87, %90 : vector<32x8xf32>
    %92 = tpu.concatenate %91, %86 in 1 : vector<32x8xf32>, vector<32x16xf32> -> vector<32x24xf32>
    %c0_31 = arith.constant 0 : index
    %c0_32 = arith.constant 0 : index
    %93 = vector.load %arg5[%c0_31, %c0_32] : memref<32x24xf32, #tpu.memory_space<vmem>>, vector<32x24xf32>
    tpu.vector_store %arg5[%c0_31, %c0_32], %92 {strides = array<i32>} : memref<32x24xf32, #tpu.memory_space<vmem>>, vector<32x24xf32>,
    return
  }
}

</mosaic_0001>

<bundles_post_ra>
// kernel: tile.18
= control target key start
LH: loop header
LB: loop body
LE: loop exit
PB: predicated region body
PF: predicated region fallthrough
CT: control target
= control target key end

     0   :  { %s22_s0 = inlined_call_operand.vmem [shape: f32[16], index: 0, kind: input, shape index: {}]   ;;  %s23_s1 = inlined_call_operand.vmem [shape: f32[2,16], index: 1, kind: output, shape index: {}]  }
   0x1   :  { %v4_v0 = vld [vmem:[%s22_s0] ss:$0 sm:$0xff] }
   0x2   :  { %5 = vst [vmem:[%s23_s1] sm:$0x3] %v4_v0 }

// kernel: tile.19
= control target key start
LH: loop header
LB: loop body
LE: loop exit
PB: predicated region body
PF: predicated region fallthrough
CT: control target
= control target key end

     0   :  { %vm7_vm0 = vcmask 130048   ;;  %vm13_vm1 = vcmask 261248   ;;  %s39_s0 = inlined_call_operand.vmem [shape: f32[2,16], index: 0, kind: input, shape index: {}]   ;;  %s40_s1 = inlined_call_operand.vmem [shape: f32[32,1], index: 1, kind: output, shape index: {}]  }
   0x1   :  { %v4_v0 = vld [vmem:[%s39_s0] sm:$0x3]  ;;  %s22_s0 = smov 16  }
   0x2   :  { %5 = vst [vmem:[#allocation1] sm:$0x3] %v4_v0 }
   0x9   :  { %v10_v1 = vld [vmem:[#allocation1 + $0x1] sm:$0x1]   ;;  %v6_v2 = vld [vmem:[#allocation1] sm:$0x1]  }
   0xa   :  { %11 = vrot.lane.b32.xlu0 %v10_v1, %s22_s0  ;;  %8 = vst.msk [vmem:[#allocation0] sm:$0x1] %vm7_vm0, %v6_v2  }
  0x7c   :  { %v12_v3 = vpop.permute.xlu0 %11  }
  0x7d   :  { %14 = vst.msk [vmem:[#allocation0] sm:$0x1] %vm13_vm1, %v12_v3  }
  0x84   :  { %v17_v4 = vld [vmem:[#allocation0] sm:$0x1] }
  0x85   :  { %20 = vst [vmem:[%s40_s1] sm:$0x1] %v17_v4 }

// kernel: fvae_encoder_pallas.1
= control target key start
LH: loop header
LB: loop body
LE: loop exit
PB: predicated region body
PF: predicated region fallthrough
CT: control target
= control target key end

     0   :  { %v986_v2 = vmov 2   ;;  %v987_v3 = vmov 0   ;;  %vm46_vm0 = vcmask 523264   ;;  %v988_v16 = vmov 1   ;;  %s989_s26 = smov 48   ;;  %s991_s6 = smov 32   ;;  %s1445_s4 = inlined_call_operand.vmem [shape: f32[232,32], index: 4, kind: input, shape index: {}]   ;;  %s1446_s1 = inlined_call_operand.vmem [shape: f32[32,3], index: 1, kind: input, shape index: {}]   ;;  %s1447_s0 = inlined_call_operand.vmem [shape: f32[32,64], index: 0, kind: input, shape index: {}]   ;;  %s1448_s2 = inlined_call_operand.vmem [shape: f32[32,8], index: 2, kind: input, shape index: {}]   ;;  %s1449_s3 = inlined_call_operand.vmem [shape: f32[32,8], index: 3, kind: input, shape index: {}]   ;;  %s1450_s5 = inlined_call_operand.vmem [shape: f32[32,24], index: 5, kind: output, shape index: {}]  }
   0x1   :  { %v43_v0 = vld [vmem:[%s1445_s4 + $0x38] sm:$0xff]  ;;  %v42_v1 = vld [vmem:[%s1445_s4 + $0x30] sm:$0xff]  ;;  %914 = vset.pattern.permute.xlu1 %v986_v2  ;;  %913 = vset.pattern.permute.xlu0 %v987_v3  ;;  %v41_v4 = vld [vmem:[%s1445_s4 + $0x28] sm:$0xff]  ;;  %vm149_vm1 = vcmask 1046528   ;;  %vm116_vm2 = vcmask 1040384   ;;  %vm231_vm3 = vcmask 261120  }
   0x2   :  { %67 = vmatpush.msra.mxu0 %v43_v0  ;;  %916 = vset.pattern.permute.xlu2 %v987_v3  ;;  %v24_v5 = vld [vmem:[%s1446_s1] sm:$0xff]  ;;  %v1044_v7 = vld [vmem:[%s1446_s1 + $0x18] sm:$0xff]  ;;  %v38_v9 = vld [vmem:[%s1445_s4 + $0x10] sm:$0xff]  ;;  %vm226_vm4 = vcmask 130048   ;;  %vm236_vm5 = vcmask 392192   ;;  %vm250_vm6 = vcmask 457728  }
   0x3   :  { %163 = vperm.xlu1 %914, %v24_v5   ;;  %v40_v6 = vld [vmem:[%s1445_s4 + $0x20] sm:$0xff]  ;;  %90 = vperm.xlu0 %913, %v24_v5   ;;  %v39_v8 = vld [vmem:[%s1445_s4 + $0x18] sm:$0xff]  ;;  %v26_v10 = vld [vmem:[%s1446_s1 + $0x10] sm:$0xff]  ;;  %s992_s25 = smov 112   ;;  %s994_s9 = smov 120  }
   0x4   :  { %68 = vmatpush.msra.mxu0 %v42_v1  ;;  %105 = vperm.xlu2 %916, %v1044_v7   ;;  %v25_v11 = vld [vmem:[%s1446_s1 + $0x8] sm:$0xff]  ;;  %v36_v13 = vld [vmem:[%s1445_s4] sm:$0xff]  ;;  %v22_v17 = vld [vmem:[%s1447_s0 + $0x10] sm:$0xff] }
   0x5   :  { %v37_v12 = vld [vmem:[%s1445_s4 + $0x8] sm:$0xff]  ;;  %v20_v14 = vld [vmem:[%s1447_s0] sm:$0xff]  ;;  %v23_v18 = vld [vmem:[%s1447_s0 + $0x18] sm:$0xff] }
   0x6   :  { %69 = vmatpush.msra.mxu0 %v41_v4  ;;  %v21_v15 = vld [vmem:[%s1447_s0 + $0x8] sm:$0xff]  ;;  %v28_v19 = vld [vmem:[%s1448_s2] sm:$0xff]  ;;  %s990_s0 = smov 16   ;;  %v30_v50 = vld [vmem:[%s1448_s2 + $0x10] sm:$0xff] }
   0x7   :  { %v29_v20 = vld [vmem:[%s1448_s2 + $0x8] sm:$0xff]  ;;  %v924_v21 = vld [vmem:[%s1445_s4 + $0xe0] ss:$0 sm:$0xff]  ;;  %v31_v55 = vld [vmem:[%s1448_s2 + $0x18] sm:$0xff] }
   0x8   :  { %70 = vmatpush.msra.mxu0 %v40_v6  ;;  %v247_v56 = vld [vmem:[%s1445_s4 + $0x70] sm:$0xff]  ;;  %v246_v57 = vld [vmem:[%s1445_s4 + $0x68] sm:$0xff]  ;;  %v245_v58 = vld [vmem:[%s1445_s4 + $0x60] sm:$0xff] }
   0x9   :  { %272 = vmatpush.msra.mxu1 %v247_v56  ;;  %895 = vmatpush.msra.mxu3 %v247_v56  ;;  %v244_v59 = vld [vmem:[%s1445_s4 + $0x58] sm:$0xff]  ;;  %v243_v60 = vld [vmem:[%s1445_s4 + $0x50] sm:$0xff]  ;;  %v242_v61 = vld [vmem:[%s1445_s4 + $0x48] sm:$0xff] }
   0xa   :  { %71 = vmatpush.msra.mxu0 %v39_v8  ;;  %v241_v62 = vld [vmem:[%s1445_s4 + $0x40] sm:$0xff] }
   0xb   :  { %915 = vset.pattern.permute.xlu1 %v987_v3  ;;  %95 = vperm.xlu0 %913, %v25_v11  }
   0xc   :  { %72 = vmatpush.msra.mxu0 %v38_v9  ;;  %100 = vperm.xlu1 %915, %v26_v10  }
   0xd   :  { %917 = vset.pattern.permute.xlu2 %v986_v2  ;;  %273 = vmatpush.msra.mxu1 %v246_v57 }
   0xe   :  { %73 = vmatpush.msra.mxu0 %v37_v12  ;;  %167 = vperm.xlu2 %917, %v25_v11  }
   0xf   :  { %896 = vmatpush.msra.mxu3 %v246_v57  ;;  %274 = vmatpush.msra.mxu1 %v245_v58 }
  0x10   :  { %74 = vmatpush.msra.mxu0 %v36_v13 }
  0x11   :  { %863 = vmatmul.msk.f32.vlgmr.msra.gmra.mxu0 %vm46_vm0, %v20_v14  ;;  %897 = vmatpush.msra.mxu3 %v245_v58 }
  0x12   :  { %275 = vmatpush.msra.mxu1 %v244_v59 }
  0x13   :  { %918 = vset.pattern.permute.xlu0 %v986_v2  ;;  %898 = vmatpush.msra.mxu3 %v244_v59 }
  0x14   :  { %919 = vset.pattern.permute.xlu1 %v986_v2  ;;  %171 = vperm.xlu0 %918, %v26_v10  }
  0x15   :  { %175 = vperm.xlu1 %919, %v1044_v7   ;;  %276 = vmatpush.msra.mxu1 %v243_v60 }
  0x16   :  { %920 = vset.pattern.permute.xlu2 %v988_v16  ;;  %899 = vmatpush.msra.mxu3 %v243_v60 }
  0x17   :  { %130 = vperm.xlu2 %920, %v24_v5   ;;  %277 = vmatpush.msra.mxu1 %v242_v61 }
  0x18   :  { %900 = vmatpush.msra.mxu3 %v242_v61 }
  0x19   :  { %864 = vmatmul.msk.f32.gmra.mxu0 %vm46_vm0, %v21_v15  ;;  %278 = vmatpush.msra.mxu1 %v241_v62 }
  0x1a   :  { %901 = vmatpush.msra.mxu3 %v241_v62 }
  0x1c   :  { %922 = vset.pattern.permute.xlu0 %v988_v16 }
  0x1d   :  { %921 = vset.pattern.permute.xlu1 %v988_v16  ;;  %214 = vrot.lane.b32.xlu0 %v28_v19, %s989_s26 }
  0x1e   :  { %134 = vperm.xlu1 %921, %v25_v11  }
  0x1f   :  { %138 = vperm.xlu2 %920, %v26_v10  }
  0x21   :  { %865 = vmatmul.msk.f32.gmra.mxu0 %vm46_vm0, %v22_v17 }
  0x25   :  { %216 = vrot.lane.b32.xlu0 %v29_v20, %s989_s26 }
  0x29   :  { %866 = vmatmul.msk.f32.gmra.mxu0 %vm46_vm0, %v23_v18 }
  0x5e   :  { %v1110_v31 = vpop.permute.xlu2 %105 }
  0x68   :  { %v1126_v41 = vpop.permute.xlu2 %167 }
  0x71   :  { %v1179_v63 = vpop.permute.xlu2 %130 }
  0x75   :  { %v1096_v22 = vpop.permute.xlu0 %90  ;;  %v1103_v26 = vpop.permute.xlu1 %163 }
  0x7d   :  { %v1105_v28 = vpop.permute.xlu0 %95 }
  0x7e   :  { %v1118_v38 = vpop.permute.xlu1 %100 }
  0x86   :  { %v1136_v47 = vpop.permute.xlu0 %171 }
  0x87   :  { %v1148_v53 = vpop.permute.xlu1 %175 }
  0x8e   :  { %v76_v23 = vpop.f32.mrf.mxu0 }
  0x8f   :  { %v77_v24 = vadd.f32 %v924_v21, %v76_v23  ;;  %v1187_v4 = vpop.permute.xlu0 %214 }
  0x90   :  { %v1182_v1 = vpop.permute.xlu1 %134 }
  0x91   :  { %v1099_v25 = vmul.f32 %v1096_v22, %v77_v24 }
  0x93   :  { %182 = vrot.lane.b32.xlu1 %v1099_v25, %s990_s0  ;;  %v150_v32 = vrot.slane %v1099_v25, 1  ;;  %v117_v0 = vrot.slane %v1099_v25, 7 }
  0x95   :  { %v128_v3 = vsel %vm116_vm2, 0.0, %v117_v0 }
  0x96   :  { %v79_v27 = vpop.f32.mrf.mxu0  ;;  %v145_v5 = vmul.f32 %v1179_v63, %v128_v3 }
  0x97   :  { %v80_v29 = vadd.f32 %v924_v21, %v79_v27  ;;  %v1195_v11 = vpop.permute.xlu0 %216 }
  0x99   :  { %v1108_v30 = vmul.f32 %v1105_v28, %v80_v29 }
  0x9b   :  { %184 = vrot.lane.b32.xlu0 %v1108_v30, %s990_s0  ;;  %v151_v33 = vrot.slane %v1108_v30, 1  ;;  %v118_v12 = vrot.slane %v1108_v30, 7 }
  0x9d   :  { %v152_v34 = vsel %vm149_vm1, %v150_v32, %v151_v33  ;;  %v119_v13 = vsel %vm116_vm2, %v117_v0, %v118_v12 }
  0x9e   :  { %v82_v35 = vpop.f32.mrf.mxu0  ;;  %v178_v36 = vmul.f32 %v1103_v26, %v152_v34  ;;  %v146_v15 = vmul.f32 %v1182_v1, %v119_v13 }
  0x9f   :  { %v83_v37 = vadd.f32 %v924_v21, %v82_v35 }
  0xa0   :  { %198 = vrot.lane.b32.xlu2 %v178_v36, %s991_s6 }
  0xa1   :  { %v1122_v39 = vmul.f32 %v1118_v38, %v83_v37 }
  0xa3   :  { %142 = vperm.xlu0 %922, %v1044_v7   ;;  %v153_v40 = vrot.slane %v1122_v39, 1  ;;  %v120_v16 = vrot.slane %v1122_v39, 7 }
  0xa5   :  { %v154_v42 = vsel %vm149_vm1, %v151_v33, %v153_v40  ;;  %v121_v23 = vsel %vm116_vm2, %v118_v12, %v120_v16 }
  0xa6   :  { %v85_v43 = vpop.f32.mrf.mxu0  ;;  %v179_v44 = vmul.f32 %v1126_v41, %v154_v42 }
  0xa7   :  { %v86_v45 = vadd.f32 %v924_v21, %v85_v43 }
  0xa8   :  { %200 = vrot.lane.b32.xlu1 %v179_v44, %s991_s6  ;;  %186 = vrot.lane.b32.xlu2 %v1122_v39, %s990_s0 }
  0xa9   :  { %v1134_v46 = vmul.f32 %v1110_v31, %v86_v45 }
  0xab   :  { %v155_v48 = vrot.slane %v1134_v46, 1  ;;  %923 = vset.pattern.permute.xlu0 %v986_v2  ;;  %v1184_v2 = vpop.permute.xlu2 %138  ;;  %v122_v35 = vrot.slane %v1134_v46, 7 }
  0xac   :  { %v147_v24 = vmul.f32 %v1184_v2, %v121_v23 }
  0xad   :  { %v156_v49 = vsel %vm149_vm1, %v153_v40, %v155_v48  ;;  %v161_v52 = vsel %vm149_vm1, %v155_v48, 0.0  ;;  %v123_v40 = vsel %vm116_vm2, %v120_v16, %v122_v35 }
  0xae   :  { %v180_v51 = vmul.f32 %v1136_v47, %v156_v49  ;;  %v181_v54 = vmul.f32 %v1148_v53, %v161_v52 }
  0xb0   :  { %202 = vrot.lane.b32.xlu1 %v180_v51, %s991_s6  ;;  %218 = vrot.lane.b32.xlu2 %v30_v50, %s989_s26  ;;  %v925_v50 = vld [vmem:[%s1445_s4 + $0xe1] ss:$0 sm:$0xff] }
  0xb8   :  { %188 = vrot.lane.b32.xlu1 %v1134_v46, %s990_s0  ;;  %204 = vrot.lane.b32.xlu2 %v181_v54, %s991_s6 }
  0xc0   :  { %220 = vrot.lane.b32.xlu1 %v31_v55, %s989_s26 }
  0xfa   :  { %v199_v7 = vpop.permute.xlu2 %198 }
 0x102   :  { %v187_v17 = vpop.permute.xlu2 %186 }
 0x103   :  { %v229_v27 = vsel %vm226_vm4, %v147_v24, %v187_v17 }
 0x105   :  { %v183_v6 = vpop.permute.xlu1 %182 }
 0x106   :  { %v227_v8 = vsel %vm226_vm4, %v145_v5, %v183_v6 }
 0x107   :  { %v232_v9 = vsel %vm231_vm3, %v227_v8, %v199_v7 }
 0x108   :  { %v237_v10 = vsel %vm236_vm5, %v232_v9, %v1187_v4 }
 0x109   :  { %867 = vmatmul.msk.f32.vlgmr.msra.gmra.mxu1 %vm250_vm6, %v237_v10 }
 0x10a   :  { %v1209_v32 = vpop.permute.xlu2 %218 }
 0x10d   :  { %v185_v14 = vpop.permute.xlu0 %184 }
 0x10e   :  { %v228_v18 = vsel %vm226_vm4, %v146_v15, %v185_v14 }
 0x112   :  { %v205_v44 = vpop.permute.xlu2 %204 }
 0x115   :  { %v1216_v36 = vpop.permute.xlu0 %142 }
 0x116   :  { %v148_v42 = vmul.f32 %v1216_v36, %v123_v40 }
 0x11a   :  { %v201_v19 = vpop.permute.xlu1 %200 }
 0x11b   :  { %v233_v20 = vsel %vm231_vm3, %v228_v18, %v201_v19 }
 0x11c   :  { %v238_v21 = vsel %vm236_vm5, %v233_v20, %v1195_v11 }
 0x11d   :  { %868 = vmatmul.msk.f32.gmra.mxu1 %vm250_vm6, %v238_v21 }
 0x122   :  { %v203_v29 = vpop.permute.xlu1 %202 }
 0x123   :  { %v234_v33 = vsel %vm231_vm3, %v229_v27, %v203_v29 }
 0x124   :  { %v239_v34 = vsel %vm236_vm5, %v234_v33, %v1209_v32  ;;  %v393_v33 = vld [vmem:[%s1445_s4 + $0xb8] sm:$0xff] }
 0x125   :  { %869 = vmatmul.msk.f32.vlgmr.msra.gmra.mxu3 %vm250_vm6, %v239_v34  ;;  %902 = vmatpush.msra.mxu2 %v393_v33 }
 0x126   :  { %422 = vmatpush.msrb.mxu0 %v393_v33 }
 0x12a   :  { %v189_v37 = vpop.permute.xlu1 %188 }
 0x12b   :  { %v230_v43 = vsel %vm226_vm4, %v148_v42, %v189_v37 }
 0x12c   :  { %v235_v48 = vsel %vm231_vm3, %v230_v43, %v205_v44 }
 0x132   :  { %v1221_v45 = vpop.permute.xlu1 %220 }
 0x133   :  { %v240_v49 = vsel %vm236_vm5, %v235_v48, %v1221_v45 }
 0x134   :  { %870 = vmatmul.msk.f32.gmra.mxu3 %vm250_vm6, %v240_v49 }
 0x186   :  { %v280_v51 = vpop.f32.mrf.mxu1 }
 0x187   :  { %v1230_v52 = vadd.f32 %v925_v50, %v280_v51 }
 0x189   :  { %v871_v54 = vmul.f32 -1.442695, %v1230_v52 }
 0x18b   :  { %930 = vpow2.f32 %v871_v54 }
 0x191   :  { %v931_v55 = vpop.eup %930 }
 0x192   :  { %v308_v56 = vadd.f32 1.0, %v931_v55 }
 0x194   :  { %932 = vrcp.f32 %v308_v56  ;;  %v323_v0 = vand.u32 2147483648, %v308_v56  ;;  %v321_v5 = vand.u32 2147483647, %v308_v56  ;;  %vm317_vm8 = vweird.f32 %v308_v56 }
 0x196   :  { %v324_v7 = vor.u32 1.1754944e-38, %v323_v0  ;;  %vm322_vm10 = vcmp.eq.f32.partialorder %v321_v5, 8.507059e+37 }
 0x19a   :  { %v933_v57 = vpop.eup %932  ;;  %v283_v58 = vpop.f32.mrf.mxu1 }
 0x19b   :  { %v1233_v59 = vadd.f32 %v925_v50, %v283_v58  ;;  %v313_v60 = vmul.f32 %v933_v57, %v308_v56  ;;  %vm318_vm7 = vweird.f32 %v933_v57 }
 0x19c   :  { %vm319_vm9 = vmor %vm317_vm8, %vm318_vm7 }
 0x19d   :  { %v872_v61 = vmul.f32 -1.442695, %v1233_v59  ;;  %v314_v62 = vsub.f32 1.0, %v313_v60 }
 0x19f   :  { %934 = vpow2.f32 %v872_v61  ;;  %v315_v3 = vmul.f32 %v933_v57, %v314_v62 }
 0x1a1   :  { %v316_v6 = vadd.f32 %v933_v57, %v315_v3 }
 0x1a3   :  { %v320_v8 = vsel %vm319_vm9, %v933_v57, %v316_v6 }
 0x1a4   :  { %v325_v9 = vsel %vm322_vm10, %v324_v7, %v320_v8 }
 0x1a5   :  { %v935_v10 = vpop.eup %934  ;;  %376 = vrot.lane.b32.xlu0 %v325_v9, %s992_s25 }
 0x1a6   :  { %v309_v12 = vadd.f32 1.0, %v935_v10 }
 0x1a8   :  { %936 = vrcp.f32 %v309_v12  ;;  %v286_v13 = vpop.f32.mrf.mxu3  ;;  %v338_v19 = vand.u32 2147483648, %v309_v12  ;;  %v336_v23 = vand.u32 2147483647, %v309_v12  ;;  %vm332_vm12 = vweird.f32 %v309_v12 }
 0x1a9   :  { %v1237_v14 = vadd.f32 %v925_v50, %v286_v13 }
 0x1aa   :  { %v339_v29 = vor.u32 1.1754944e-38, %v338_v19  ;;  %vm337_vm14 = vcmp.eq.f32.partialorder %v336_v23, 8.507059e+37 }
 0x1ab   :  { %v873_v15 = vmul.f32 -1.442695, %v1237_v14 }
 0x1ad   :  { %938 = vpow2.f32 %v873_v15 }
 0x1ae   :  { %v937_v16 = vpop.eup %936 }
 0x1af   :  { %v328_v17 = vmul.f32 %v937_v16, %v309_v12  ;;  %vm333_vm11 = vweird.f32 %v937_v16  ;;  %v392_v12 = vld [vmem:[%s1445_s4 + $0xb0] sm:$0xff] }
 0x1b0   :  { %vm334_vm13 = vmor %vm332_vm12, %vm333_vm11  ;;  %903 = vmatpush.msra.mxu2 %v392_v12  ;;  %423 = vmatpush.msrb.mxu0 %v392_v12 }
 0x1b1   :  { %v329_v18 = vsub.f32 1.0, %v328_v17 }
 0x1b3   :  { %v939_v20 = vpop.eup %938  ;;  %v330_v21 = vmul.f32 %v937_v16, %v329_v18 }
 0x1b4   :  { %v310_v24 = vadd.f32 1.0, %v939_v20 }
 0x1b5   :  { %v331_v27 = vadd.f32 %v937_v16, %v330_v21 }
 0x1b6   :  { %940 = vrcp.f32 %v310_v24  ;;  %v353_v49 = vand.u32 2147483648, %v310_v24  ;;  %v351_v54 = vand.u32 2147483647, %v310_v24  ;;  %vm347_vm0 = vweird.f32 %v310_v24 }
 0x1b7   :  { %v289_v34 = vpop.f32.mrf.mxu3  ;;  %v335_v35 = vsel %vm334_vm13, %v937_v16, %v331_v27  ;;  %v926_v27 = vld [vmem:[%s1445_s4 + $0xe3] ss:$0 sm:$0xff] }
 0x1b8   :  { %v290_v37 = vadd.f32 %v925_v50, %v289_v34  ;;  %v340_v40 = vsel %vm337_vm14, %v339_v29, %v335_v35  ;;  %v354_v58 = vor.u32 1.1754944e-38, %v353_v49  ;;  %vm352_vm8 = vcmp.eq.f32.partialorder %v351_v54, 8.507059e+37 }
 0x1b9   :  { %378 = vrot.lane.b32.xlu2 %v340_v40, %s992_s25 }
 0x1ba   :  { %v874_v42 = vmul.f32 -1.442695, %v290_v37 }
 0x1bc   :  { %v941_v43 = vpop.eup %940  ;;  %942 = vpow2.f32 %v874_v42 }
 0x1bd   :  { %v343_v44 = vmul.f32 %v941_v43, %v310_v24  ;;  %vm348_vm15 = vweird.f32 %v941_v43 }
 0x1be   :  { %vm349_vm7 = vmor %vm347_vm0, %vm348_vm15 }
 0x1bf   :  { %v344_v48 = vsub.f32 1.0, %v343_v44 }
 0x1c1   :  { %v345_v51 = vmul.f32 %v941_v43, %v344_v48 }
 0x1c2   :  { %v943_v55 = vpop.eup %942 }
 0x1c3   :  { %v311_v56 = vadd.f32 1.0, %v943_v55  ;;  %v346_v57 = vadd.f32 %v941_v43, %v345_v51 }
 0x1c5   :  { %944 = vrcp.f32 %v311_v56  ;;  %v350_v50 = vsel %vm349_vm7, %v941_v43, %v346_v57  ;;  %v368_v3 = vand.u32 2147483648, %v311_v56  ;;  %v366_v6 = vand.u32 2147483647, %v311_v56 }
 0x1c6   :  { %v355_v60 = vsel %vm352_vm8, %v354_v58, %v350_v50  ;;  %vm362_vm10 = vweird.f32 %v311_v56  ;;  %946 = vtanh.f32 %v1233_v59 }
 0x1c7   :  { %380 = vrot.lane.b32.xlu1 %v355_v60, %s992_s25  ;;  %v369_v8 = vor.u32 1.1754944e-38, %v368_v3  ;;  %vm367_vm12 = vcmp.eq.f32.partialorder %v366_v6, 8.507059e+37  ;;  %948 = vtanh.f32 %v1230_v52 }
 0x1c8   :  { %950 = vtanh.f32 %v1237_v14 }
 0x1c9   :  { %952 = vtanh.f32 %v290_v37 }
 0x1cb   :  { %v945_v61 = vpop.eup %944 }
 0x1cc   :  { %v358_v62 = vmul.f32 %v945_v61, %v311_v56  ;;  %vm363_vm9 = vweird.f32 %v945_v61  ;;  %v947_v13 = vpop.eup %946 }
 0x1cd   :  { %vm364_vm11 = vmor %vm362_vm10, %vm363_vm9  ;;  %v949_v17 = vpop.eup %948 }
 0x1ce   :  { %v359_v0 = vsub.f32 1.0, %v358_v62  ;;  %v951_v20 = vpop.eup %950 }
 0x1cf   :  { %v953_v52 = vpop.eup %952 }
 0x1d0   :  { %v360_v5 = vmul.f32 %v945_v61, %v359_v0 }
 0x1d2   :  { %v361_v7 = vadd.f32 %v945_v61, %v360_v5 }
 0x1d4   :  { %v365_v9 = vsel %vm364_vm11, %v945_v61, %v361_v7 }
 0x1d5   :  { %v370_v10 = vsel %vm367_vm12, %v369_v8, %v365_v9 }
 0x1d6   :  { %382 = vrot.lane.b32.xlu2 %v370_v10, %s992_s25 }
 0x213   :  { %v379_v15 = vpop.permute.xlu2 %378 }
 0x214   :  { %v389_v16 = vmul.f32 %v947_v13, %v379_v15  ;;  %v527_v13 = vld [vmem:[%s1445_s4 + $0x88] sm:$0xff]  ;;  %v526_v15 = vld [vmem:[%s1445_s4 + $0x80] sm:$0xff] }
 0x216   :  { %876 = vmatmul.msk.f32.vlgmr.msra.gmra.mxu2 %vm226_vm4, %v389_v16  ;;  %v525_v16 = vld [vmem:[%s1445_s4 + $0x78] sm:$0xff] }
 0x217   :  { %v377_v18 = vpop.permute.xlu0 %376 }
 0x218   :  { %v388_v19 = vmul.f32 %v949_v17, %v377_v18 }
 0x21a   :  { %875 = vmatmul.msk.f32.vlgmr.msrb.gmra.mxu0 %vm226_vm4, %v388_v19 }
 0x230   :  { %v383_v59 = vpop.permute.xlu2 %382 }
 0x231   :  { %v391_v24 = vmul.f32 %v953_v52, %v383_v59 }
 0x239   :  { %v381_v21 = vpop.permute.xlu1 %380 }
 0x23a   :  { %v390_v23 = vmul.f32 %v951_v20, %v381_v21 }
 0x23c   :  { %877 = vmatmul.msk.f32.gmra.mxu2 %vm226_vm4, %v390_v23 }
 0x244   :  { %878 = vmatmul.msk.f32.gmra.mxu2 %vm226_vm4, %v391_v24 }
 0x297   :  { %v425_v29 = vpop.f32.mrf.mxu0 }
 0x298   :  { %v1259_v33 = vadd.f32 %v926_v27, %v425_v29 }
 0x299   :  { %v428_v34 = vpop.f32.mrf.mxu2 }
 0x29a   :  { %v437_v14 = vadd.f32 %v1259_v33, %v1099_v25  ;;  %v1263_v35 = vadd.f32 %v926_v27, %v428_v34 }
 0x29c   :  { %v438_v37 = vadd.f32 %v1263_v35, %v1108_v30  ;;  %v441_v40 = vmul.f32 %v437_v14, %v1096_v22 }
 0x29e   :  { %485 = vrot.lane.b32.xlu0 %v441_v40, %s990_s0  ;;  %v442_v42 = vmul.f32 %v438_v37, %v1105_v28  ;;  %v453_v43 = vrot.slane %v441_v40, 7  ;;  %v469_v44 = vrot.slane %v441_v40, 1 }
 0x2a0   :  { %487 = vrot.lane.b32.xlu2 %v442_v42, %s990_s0  ;;  %v454_v48 = vrot.slane %v442_v42, 7  ;;  %v470_v49 = vrot.slane %v442_v42, 1  ;;  %v464_v17 = vsel %vm116_vm2, 0.0, %v453_v43 }
 0x2a1   :  { %v465_v19 = vmul.f32 %v464_v17, %v1179_v63 }
 0x2a2   :  { %v471_v51 = vsel %vm149_vm1, %v469_v44, %v470_v49  ;;  %v455_v25 = vsel %vm116_vm2, %v453_v43, %v454_v48 }
 0x2a3   :  { %v481_v54 = vmul.f32 %v471_v51, %v1103_v26  ;;  %v466_v24 = vmul.f32 %v455_v25, %v1182_v1  ;;  %v927_v51 = vld [vmem:[%s1445_s4 + $0xe2] ss:$0 sm:$0xff] }
 0x2a5   :  { %501 = vrot.lane.b32.xlu1 %v481_v54, %s991_s6 }
 0x2bf   :  { %v431_v30 = vpop.f32.mrf.mxu2 }
 0x2c0   :  { %v1275_v55 = vadd.f32 %v926_v27, %v431_v30 }
 0x2c2   :  { %v439_v56 = vadd.f32 %v1275_v55, %v1122_v39 }
 0x2c4   :  { %v443_v57 = vmul.f32 %v439_v56, %v1118_v38 }
 0x2c6   :  { %v456_v58 = vrot.slane %v443_v57, 7  ;;  %v472_v50 = vrot.slane %v443_v57, 1  ;;  %489 = vrot.lane.b32.xlu1 %v443_v57, %s990_s0 }
 0x2c7   :  { %v434_v60 = vpop.f32.mrf.mxu2 }
 0x2c8   :  { %v1281_v61 = vadd.f32 %v926_v27, %v434_v60  ;;  %v473_v62 = vsel %vm149_vm1, %v470_v49, %v472_v50  ;;  %v457_v26 = vsel %vm116_vm2, %v454_v48, %v456_v58 }
 0x2c9   :  { %v482_v0 = vmul.f32 %v473_v62, %v1126_v41  ;;  %v531_v41 = vld [vmem:[%s1445_s4 + $0xa8] sm:$0xff]  ;;  %v467_v63 = vmul.f32 %v457_v26, %v1184_v2 }
 0x2ca   :  { %v440_v3 = vadd.f32 %v1281_v61, %v1134_v46  ;;  %v530_v46 = vld [vmem:[%s1445_s4 + $0xa0] sm:$0xff]  ;;  %555 = vmatpush.msrb.mxu3 %v531_v41  ;;  %v676_v41 = vld [vmem:[%s1445_s4 + $0xc8] sm:$0xff] }
 0x2cb   :  { %503 = vrot.lane.b32.xlu0 %v482_v0, %s991_s6  ;;  %705 = vmatpush.msrb.mxu2 %v676_v41 }
 0x2cc   :  { %v444_v39 = vmul.f32 %v440_v3, %v1110_v31  ;;  %556 = vmatpush.msrb.mxu3 %v530_v46 }
 0x2ce   :  { %v458_v5 = vrot.slane %v444_v39, 7  ;;  %v474_v6 = vrot.slane %v444_v39, 1 }
 0x2d0   :  { %v475_v7 = vsel %vm149_vm1, %v472_v50, %v474_v6  ;;  %v480_v8 = vsel %vm149_vm1, %v474_v6, 0.0  ;;  %v459_v9 = vsel %vm116_vm2, %v456_v58, %v458_v5 }
 0x2d1   :  { %v483_v10 = vmul.f32 %v475_v7, %v1136_v47  ;;  %v484_v12 = vmul.f32 %v480_v8, %v1148_v53  ;;  %v529_v47 = vld [vmem:[%s1445_s4 + $0x98] sm:$0xff]  ;;  %v528_v53 = vld [vmem:[%s1445_s4 + $0x90] sm:$0xff]  ;;  %v468_v1 = vmul.f32 %v459_v9, %v1216_v36 }
 0x2d2   :  { %557 = vmatpush.msrb.mxu3 %v529_v47 }
 0x2d3   :  { %505 = vrot.lane.b32.xlu2 %v483_v10, %s991_s6  ;;  %491 = vrot.lane.b32.xlu0 %v444_v39, %s990_s0 }
 0x2d4   :  { %507 = vrot.lane.b32.xlu1 %v484_v12, %s991_s6  ;;  %558 = vmatpush.msrb.mxu3 %v528_v53 }
 0x2d6   :  { %559 = vmatpush.msrb.mxu3 %v527_v13 }
 0x2d8   :  { %560 = vmatpush.msrb.mxu3 %v526_v15 }
 0x2da   :  { %561 = vmatpush.msrb.mxu3 %v525_v16 }
 0x2fa   :  { %v488_v52 = vpop.permute.xlu2 %487 }
 0x2fb   :  { %v514_v27 = vsel %vm226_vm4, %v466_v24, %v488_v52 }
 0x310   :  { %v486_v18 = vpop.permute.xlu0 %485 }
 0x311   :  { %v513_v20 = vsel %vm226_vm4, %v465_v19, %v486_v18 }
 0x317   :  { %v502_v21 = vpop.permute.xlu1 %501 }
 0x318   :  { %v517_v23 = vsel %vm231_vm3, %v513_v20, %v502_v21 }
 0x319   :  { %v521_v59 = vsel %vm236_vm5, %v517_v23, %v1187_v4 }
 0x31a   :  { %879 = vmatmul.msk.f32.vlgmr.msrb.gmra.mxu3 %vm250_vm6, %v521_v59 }
 0x32d   :  { %v506_v40 = vpop.permute.xlu2 %505 }
 0x338   :  { %v490_v34 = vpop.permute.xlu1 %489 }
 0x339   :  { %v515_v4 = vsel %vm226_vm4, %v467_v63, %v490_v34 }
 0x33a   :  { %v519_v42 = vsel %vm231_vm3, %v515_v4, %v506_v40 }
 0x33b   :  { %v523_v44 = vsel %vm236_vm5, %v519_v42, %v1209_v32 }
 0x33d   :  { %v504_v29 = vpop.permute.xlu0 %503 }
 0x33e   :  { %v518_v14 = vsel %vm231_vm3, %v514_v27, %v504_v29 }
 0x33f   :  { %v522_v37 = vsel %vm236_vm5, %v518_v14, %v1195_v11 }
 0x340   :  { %880 = vmatmul.msk.f32.gmra.mxu3 %vm250_vm6, %v522_v37 }
 0x345   :  { %v492_v43 = vpop.permute.xlu0 %491 }
 0x346   :  { %v516_v2 = vsel %vm226_vm4, %v468_v1, %v492_v43  ;;  %v508_v48 = vpop.permute.xlu1 %507 }
 0x347   :  { %v520_v11 = vsel %vm231_vm3, %v516_v2, %v508_v48 }
 0x348   :  { %881 = vmatmul.msk.f32.gmra.mxu3 %vm250_vm6, %v523_v44  ;;  %v524_v49 = vsel %vm236_vm5, %v520_v11, %v1221_v45 }
 0x350   :  { %882 = vmatmul.msk.f32.gmra.mxu3 %vm250_vm6, %v524_v49 }
 0x39d   :  { %v563_v36 = vpop.f32.mrf.mxu3 }
 0x39e   :  { %v1347_v25 = vadd.f32 %v927_v51, %v563_v36 }
 0x3a0   :  { %v883_v32 = vmul.f32 -1.442695, %v1347_v25 }
 0x3a2   :  { %954 = vpow2.f32 %v883_v32 }
 0x3a8   :  { %v955_v54 = vpop.eup %954 }
 0x3a9   :  { %v591_v30 = vadd.f32 1.0, %v955_v54 }
 0x3ab   :  { %956 = vrcp.f32 %v591_v30  ;;  %v606_v50 = vand.u32 2147483648, %v591_v30  ;;  %v604_v60 = vand.u32 2147483647, %v591_v30  ;;  %vm600_vm2 = vweird.f32 %v591_v30 }
 0x3ad   :  { %v607_v26 = vor.u32 1.1754944e-38, %v606_v50  ;;  %vm605_vm5 = vcmp.eq.f32.partialorder %v604_v60, 8.507059e+37 }
 0x3b1   :  { %v957_v56 = vpop.eup %956 }
 0x3b2   :  { %v596_v57 = vmul.f32 %v957_v56, %v591_v30  ;;  %vm601_vm1 = vweird.f32 %v957_v56 }
 0x3b3   :  { %vm602_vm3 = vmor %vm600_vm2, %vm601_vm1  ;;  %vm854_vm2 = vcmask 195584  }
 0x3b4   :  { %v597_v58 = vsub.f32 1.0, %v596_v57  ;;  %v675_v57 = vld [vmem:[%s1445_s4 + $0xc0] sm:$0xff] }
 0x3b5   :  { %706 = vmatpush.msrb.mxu2 %v675_v57 }
 0x3b6   :  { %v598_v45 = vmul.f32 %v957_v56, %v597_v58 }
 0x3b8   :  { %v599_v62 = vadd.f32 %v957_v56, %v598_v45 }
 0x3ba   :  { %v603_v0 = vsel %vm602_vm3, %v957_v56, %v599_v62 }
 0x3bb   :  { %v608_v3 = vsel %vm605_vm5, %v607_v26, %v603_v0 }
 0x3bc   :  { %659 = vrot.lane.b32.xlu2 %v608_v3, %s992_s25 }
 0x3c3   :  { %v566_v39 = vpop.f32.mrf.mxu3 }
 0x3c4   :  { %v1351_v5 = vadd.f32 %v927_v51, %v566_v39 }
 0x3c6   :  { %v884_v6 = vmul.f32 -1.442695, %v1351_v5 }
 0x3c8   :  { %958 = vpow2.f32 %v884_v6 }
 0x3cb   :  { %v569_v7 = vpop.f32.mrf.mxu3 }
 0x3cc   :  { %v1354_v8 = vadd.f32 %v927_v51, %v569_v7 }
 0x3ce   :  { %v959_v9 = vpop.eup %958  ;;  %v885_v10 = vmul.f32 -1.442695, %v1354_v8 }
 0x3cf   :  { %v592_v12 = vadd.f32 1.0, %v959_v9 }
 0x3d0   :  { %960 = vpow2.f32 %v885_v10 }
 0x3d1   :  { %962 = vrcp.f32 %v592_v12  ;;  %v621_v19 = vand.u32 2147483648, %v592_v12  ;;  %v619_v21 = vand.u32 2147483647, %v592_v12  ;;  %vm615_vm13 = vweird.f32 %v592_v12 }
 0x3d3   :  { %v572_v46 = vpop.f32.mrf.mxu3  ;;  %v622_v27 = vor.u32 1.1754944e-38, %v621_v19  ;;  %vm620_vm15 = vcmp.eq.f32.partialorder %v619_v21, 8.507059e+37 }
 0x3d4   :  { %v1360_v47 = vadd.f32 %v927_v51, %v572_v46 }
 0x3d6   :  { %v961_v53 = vpop.eup %960  ;;  %v886_v13 = vmul.f32 -1.442695, %v1360_v47 }
 0x3d7   :  { %v963_v15 = vpop.eup %962  ;;  %v593_v16 = vadd.f32 1.0, %v961_v53 }
 0x3d8   :  { %964 = vpow2.f32 %v886_v13  ;;  %v611_v17 = vmul.f32 %v963_v15, %v592_v12  ;;  %vm616_vm6 = vweird.f32 %v963_v15 }
 0x3d9   :  { %966 = vrcp.f32 %v593_v16  ;;  %vm617_vm14 = vmor %vm615_vm13, %vm616_vm6  ;;  %v636_v37 = vand.u32 2147483648, %v593_v16  ;;  %v634_v40 = vand.u32 2147483647, %v593_v16  ;;  %vm630_vm7 = vweird.f32 %v593_v16 }
 0x3da   :  { %v612_v18 = vsub.f32 1.0, %v611_v17 }
 0x3db   :  { %v637_v1 = vor.u32 1.1754944e-38, %v636_v37  ;;  %vm635_vm9 = vcmp.eq.f32.partialorder %v634_v40, 8.507059e+37 }
 0x3dc   :  { %v613_v20 = vmul.f32 %v963_v15, %v612_v18 }
 0x3de   :  { %v965_v23 = vpop.eup %964  ;;  %v614_v59 = vadd.f32 %v963_v15, %v613_v20 }
 0x3df   :  { %v967_v52 = vpop.eup %966  ;;  %v594_v24 = vadd.f32 1.0, %v965_v23  ;;  %v749_v23 = vld [vmem:[%s1445_s4 + $0xd8] sm:$0xff] }
 0x3e0   :  { %v618_v29 = vsel %vm617_vm14, %v963_v15, %v614_v59  ;;  %v626_v34 = vmul.f32 %v967_v52, %v593_v16  ;;  %vm631_vm0 = vweird.f32 %v967_v52  ;;  %786 = vmatpush.msrb.mxu1 %v749_v23 }
 0x3e1   :  { %968 = vrcp.f32 %v594_v24  ;;  %v623_v14 = vsel %vm620_vm15, %v622_v27, %v618_v29  ;;  %vm632_vm8 = vmor %vm630_vm7, %vm631_vm0  ;;  %v651_v49 = vand.u32 2147483648, %v594_v24  ;;  %v649_v36 = vand.u32 2147483647, %v594_v24 }
 0x3e2   :  { %661 = vrot.lane.b32.xlu0 %v623_v14, %s992_s25  ;;  %v627_v63 = vsub.f32 1.0, %v626_v34  ;;  %vm645_vm11 = vweird.f32 %v594_v24  ;;  %970 = vtanh.f32 %v1347_v25 }
 0x3e3   :  { %v652_v54 = vor.u32 1.1754944e-38, %v651_v49  ;;  %vm650_vm1 = vcmp.eq.f32.partialorder %v649_v36, 8.507059e+37  ;;  %972 = vtanh.f32 %v1351_v5  ;;  %v928_v5 = vld [vmem:[%s1445_s4 + $0xe4] ss:$0 sm:$0xff] }
 0x3e4   :  { %v628_v4 = vmul.f32 %v967_v52, %v627_v63  ;;  %974 = vtanh.f32 %v1354_v8 }
 0x3e5   :  { %976 = vtanh.f32 %v1360_v47 }
 0x3e6   :  { %v629_v42 = vadd.f32 %v967_v52, %v628_v4 }
 0x3e7   :  { %v969_v43 = vpop.eup %968 }
 0x3e8   :  { %v633_v44 = vsel %vm632_vm8, %v967_v52, %v629_v42  ;;  %v641_v2 = vmul.f32 %v969_v43, %v594_v24  ;;  %vm646_vm10 = vweird.f32 %v969_v43  ;;  %v971_v58 = vpop.eup %970 }
 0x3e9   :  { %v638_v48 = vsel %vm635_vm9, %v637_v1, %v633_v44  ;;  %vm647_vm12 = vmor %vm645_vm11, %vm646_vm10  ;;  %v973_v60 = vpop.eup %972 }
 0x3ea   :  { %663 = vrot.lane.b32.xlu1 %v638_v48, %s992_s25  ;;  %v642_v11 = vsub.f32 1.0, %v641_v2  ;;  %v975_v0 = vpop.eup %974 }
 0x3eb   :  { %v977_v6 = vpop.eup %976 }
 0x3ec   :  { %v643_v51 = vmul.f32 %v969_v43, %v642_v11 }
 0x3ee   :  { %v644_v32 = vadd.f32 %v969_v43, %v643_v51 }
 0x3f0   :  { %v648_v30 = vsel %vm647_vm12, %v969_v43, %v644_v32 }
 0x3f1   :  { %v653_v56 = vsel %vm650_vm1, %v652_v54, %v648_v30  ;;  %v32_v54 = vld [vmem:[%s1449_s3] sm:$0xff] }
 0x3f2   :  { %665 = vrot.lane.b32.xlu2 %v653_v56, %s992_s25 }
 0x416   :  { %v660_v50 = vpop.permute.xlu2 %659 }
 0x417   :  { %v671_v45 = vmul.f32 %v971_v58, %v660_v50 }
 0x419   :  { %887 = vmatmul.msk.f32.vlgmr.msrb.gmra.mxu2 %vm226_vm4, %v671_v45  ;;  %v33_v45 = vld [vmem:[%s1449_s3 + $0x8] sm:$0xff] }
 0x44c   :  { %v666_v25 = vpop.permute.xlu2 %665 }
 0x44d   :  { %v674_v7 = vmul.f32 %v977_v6, %v666_v25 }
 0x454   :  { %v662_v62 = vpop.permute.xlu0 %661 }
 0x455   :  { %v672_v26 = vmul.f32 %v973_v60, %v662_v62 }
 0x457   :  { %888 = vmatmul.msk.f32.gmra.mxu2 %vm226_vm4, %v672_v26 }
 0x45c   :  { %v664_v3 = vpop.permute.xlu1 %663 }
 0x45d   :  { %v673_v39 = vmul.f32 %v975_v0, %v664_v3  ;;  %v34_v3 = vld [vmem:[%s1449_s3 + $0x10] sm:$0xff] }
 0x45f   :  { %889 = vmatmul.msk.f32.gmra.mxu2 %vm226_vm4, %v673_v39 }
 0x467   :  { %890 = vmatmul.msk.f32.gmra.mxu2 %vm226_vm4, %v674_v7 }
 0x49c   :  { %v708_v9 = vpop.f32.mrf.mxu2 }
 0x49d   :  { %v709_v8 = vadd.f32 %v928_v5, %v708_v9  ;;  %v35_v9 = vld [vmem:[%s1449_s3 + $0x18] sm:$0xff] }
 0x49f   :  { %724 = vrot.lane.b32.xlu0 %v709_v8, %s990_s0 }
 0x4da   :  { %v711_v10 = vpop.f32.mrf.mxu2 }
 0x4db   :  { %v712_v12 = vadd.f32 %v928_v5, %v711_v10 }
 0x4dd   :  { %726 = vrot.lane.b32.xlu1 %v712_v12, %s990_s0 }
 0x4e2   :  { %v714_v41 = vpop.f32.mrf.mxu2 }
 0x4e3   :  { %v715_v46 = vadd.f32 %v928_v5, %v714_v41 }
 0x4e5   :  { %728 = vrot.lane.b32.xlu2 %v715_v46, %s990_s0 }
 0x4ea   :  { %v717_v47 = vpop.f32.mrf.mxu2 }
 0x4eb   :  { %v718_v53 = vadd.f32 %v928_v5, %v717_v47 }
 0x4ed   :  { %730 = vrot.lane.b32.xlu0 %v718_v53, %s990_s0 }
 0x511   :  { %v725_v13 = vpop.permute.xlu0 %724 }
 0x512   :  { %v736_v15 = vadd.f32 %v725_v13, %v1259_v33  ;;  %v748_v33 = vld [vmem:[%s1445_s4 + $0xd0] sm:$0xff] }
 0x513   :  { %787 = vmatpush.msrb.mxu1 %v748_v33 }
 0x514   :  { %v740_v16 = vmul.f32 %v736_v15, %v1096_v22 }
 0x516   :  { %v744_v17 = vmul.f32 %v740_v16, %v1096_v22 }
 0x518   :  { %756 = vrot.lane.b32.xlu1 %v744_v17, %s992_s25 }
 0x53f   :  { %v729_v18 = vpop.permute.xlu2 %728 }
 0x540   :  { %v738_v19 = vadd.f32 %v729_v18, %v1275_v55 }
 0x542   :  { %v742_v20 = vmul.f32 %v738_v19, %v1118_v38 }
 0x544   :  { %v746_v21 = vmul.f32 %v742_v20, %v1118_v38 }
 0x546   :  { %760 = vrot.lane.b32.xlu0 %v746_v21, %s992_s25 }
 0x54f   :  { %v727_v22 = vpop.permute.xlu1 %726 }
 0x550   :  { %v737_v59 = vadd.f32 %v727_v22, %v1263_v35 }
 0x552   :  { %v741_v55 = vmul.f32 %v737_v59, %v1105_v28 }
 0x554   :  { %v745_v52 = vmul.f32 %v741_v55, %v1105_v28 }
 0x556   :  { %758 = vrot.lane.b32.xlu2 %v745_v52, %s992_s25 }
 0x55f   :  { %v731_v38 = vpop.permute.xlu0 %730 }
 0x560   :  { %v739_v24 = vadd.f32 %v731_v38, %v1281_v61  ;;  %v929_v61 = vld [vmem:[%s1445_s4 + $0xe5] ss:$0 sm:$0xff] }
 0x562   :  { %v743_v27 = vmul.f32 %v739_v24, %v1110_v31 }
 0x564   :  { %v747_v29 = vmul.f32 %v743_v27, %v1110_v31 }
 0x566   :  { %762 = vrot.lane.b32.xlu1 %v747_v29, %s992_s25  ;;  %s993_s25 = smov 8  }
 0x58a   :  { %v757_v34 = vpop.permute.xlu1 %756 }
 0x58b   :  { %891 = vmatmul.msk.f32.vlgmr.msrb.gmra.mxu1 %vm226_vm4, %v757_v34 }
 0x5b0   :  { %v759_v14 = vpop.permute.xlu2 %758 }
 0x5b1   :  { %892 = vmatmul.msk.f32.gmra.mxu1 %vm226_vm4, %v759_v14 }
 0x5b8   :  { %v761_v35 = vpop.permute.xlu0 %760 }
 0x5b9   :  { %893 = vmatmul.msk.f32.gmra.mxu1 %vm226_vm4, %v761_v35 }
 0x5d8   :  { %v763_v28 = vpop.permute.xlu1 %762 }
 0x5d9   :  { %894 = vmatmul.msk.f32.gmra.mxu1 %vm226_vm4, %v763_v28  ;;  %vm849_vm4 = vcmask 64512  }
 0x608   :  { %v789_v63 = vpop.f32.mrf.mxu1 }
 0x609   :  { %v790_v31 = vadd.f32 %v929_v61, %v789_v63 }
 0x60b   :  { %v801_v37 = vmul.f32 1.442695, %v790_v31  ;;  %837 = vrot.lane.b32.xlu0 %v790_v31, %s993_s25 }
 0x60d   :  { %978 = vpow2.f32 %v801_v37 }
 0x613   :  { %v979_v4 = vpop.eup %978 }
 0x614   :  { %813 = vrot.lane.b32.xlu2 %v979_v4, %s994_s9 }
 0x62e   :  { %v792_v40 = vpop.f32.mrf.mxu1 }
 0x62f   :  { %v793_v42 = vadd.f32 %v929_v61, %v792_v40 }
 0x631   :  { %v803_v43 = vmul.f32 1.442695, %v793_v42 }
 0x633   :  { %980 = vpow2.f32 %v803_v43 }
 0x636   :  { %v795_v1 = vpop.f32.mrf.mxu1 }
 0x637   :  { %v796_v44 = vadd.f32 %v929_v61, %v795_v1 }
 0x639   :  { %v981_v2 = vpop.eup %980  ;;  %v805_v48 = vmul.f32 1.442695, %v796_v44 }
 0x63a   :  { %815 = vrot.lane.b32.xlu0 %v981_v2, %s994_s9 }
 0x63b   :  { %982 = vpow2.f32 %v805_v48 }
 0x641   :  { %v983_v11 = vpop.eup %982 }
 0x642   :  { %817 = vrot.lane.b32.xlu1 %v983_v11, %s994_s9 }
 0x64a   :  { %839 = vrot.lane.b32.xlu1 %v793_v42, %s993_s25 }
 0x656   :  { %v798_v49 = vpop.f32.mrf.mxu1 }
 0x657   :  { %v799_v51 = vadd.f32 %v929_v61, %v798_v49 }
 0x659   :  { %v807_v36 = vmul.f32 1.442695, %v799_v51  ;;  %843 = vrot.lane.b32.xlu0 %v799_v51, %s993_s25 }
 0x65b   :  { %984 = vpow2.f32 %v807_v36 }
 0x661   :  { %v985_v32 = vpop.eup %984 }
 0x662   :  { %819 = vrot.lane.b32.xlu2 %v985_v32, %s994_s9 }
 0x66a   :  { %841 = vrot.lane.b32.xlu2 %v796_v44, %s993_s25 }
 0x66e   :  { %v814_v30 = vpop.permute.xlu2 %813 }
 0x66f   :  { %v825_v56 = vmul.f32 %v814_v30, %v32_v54 }
 0x671   :  { %v829_v57 = vadd.f32 %v825_v56, %v790_v31 }
 0x67d   :  { %v838_v58 = vpop.permute.xlu0 %837 }
 0x67e   :  { %v850_v50 = vsel %vm849_vm4, %v829_v57, %v838_v58 }
 0x67f   :  { %855 = vst.msk [vmem:[%s1450_s5] sm:$0xff] %vm854_vm2, %v850_v50 }
 0x6ac   :  { %v816_v60 = vpop.permute.xlu0 %815 }
 0x6ad   :  { %v826_v26 = vmul.f32 %v816_v60, %v33_v45 }
 0x6af   :  { %v830_v0 = vadd.f32 %v826_v26, %v793_v42 }
 0x6b4   :  { %v818_v62 = vpop.permute.xlu1 %817 }
 0x6b5   :  { %v827_v7 = vmul.f32 %v818_v62, %v34_v3 }
 0x6b7   :  { %v831_v5 = vadd.f32 %v827_v7, %v796_v44 }
 0x6bc   :  { %v820_v39 = vpop.permute.xlu2 %819  ;;  %v840_v25 = vpop.permute.xlu1 %839 }
 0x6bd   :  { %v851_v6 = vsel %vm849_vm4, %v830_v0, %v840_v25  ;;  %v828_v12 = vmul.f32 %v820_v39, %v35_v9 }
 0x6be   :  { %856 = vst.msk [vmem:[%s1450_s5 + $0x8] sm:$0xff] %vm854_vm2, %v851_v6 }
 0x6bf   :  { %v832_v41 = vadd.f32 %v828_v12, %v799_v51 }
 0x6c4   :  { %v842_v8 = vpop.permute.xlu2 %841 }
 0x6c5   :  { %v852_v10 = vsel %vm849_vm4, %v831_v5, %v842_v8 }
 0x6c6   :  { %857 = vst.msk [vmem:[%s1450_s5 + $0x10] sm:$0xff] %vm854_vm2, %v852_v10 }
 0x6cb   :  { %v844_v46 = vpop.permute.xlu0 %843 }
 0x6cc   :  { %v853_v47 = vsel %vm849_vm4, %v832_v41, %v844_v46 }
 0x6cd   :  { %858 = vst.msk [vmem:[%s1450_s5 + $0x18] sm:$0xff] %vm854_vm2, %v853_v47 }

</bundles_post_ra>
